<compile_context>
chip_gen: v7x
topology: tpu7x:2x2x1
jax: 0.10.0
libtpu: 0.0.40
codegen_flags: <defaults>
</compile_context>

<pallas_src>
import functools

import jax
import jax.numpy as jnp
from jax import lax
from jax.experimental import pallas as pl
from jax.experimental.pallas import tpu as pltpu

_VMEM_LIMIT = 48 * 1024 * 1024  # comfortably below v7x's 64 MiB physical VMEM


# --------------------------------------------------------------------------------------
# small helpers
# --------------------------------------------------------------------------------------
def _round_up(a, b):
    return ((a + b - 1) // b) * b


def _cdiv(a, b):
    return (a + b - 1) // b


def get_padding(kernel_size, dilation=1):
    return int((kernel_size * dilation - dilation) / 2)


def _sublane_pack(dtype):
    return 8 if dtype == jnp.float32 else 16


def _fold_conv_weight(w):
    """(C_out, C_in, K) -> (C_out, K*C_in); column block k*C_in:(k+1)*C_in == tap k."""
    C_out, C_in, K = w.shape
    return jnp.transpose(w, (0, 2, 1)).reshape(C_out, K * C_in)


# --------------------------------------------------------------------------------------
# Pallas kernel 1: dilated 1-D conv (+ optional fused input LeakyReLU / output tanh)
# --------------------------------------------------------------------------------------
def _conv1d_kernel(x_ref, xh_ref, w_ref, b_ref, o_ref, win_ref, col_ref=None, *,
                   K, dilation, C_in, lrelu_in, slope, tanh_out):
    tile = o_ref.shape[-1]
    tw = x_ref.shape[-1]
    # stitch main tile + halo block into a contiguous VMEM window (128-aligned stores)
    win_ref[:, :tw] = x_ref[...]
    win_ref[:, tw:] = xh_ref[...]
    x = win_ref[...]
    if lrelu_in:
        x = jnp.where(x >= 0, x, slope * x)
    if col_ref is not None:
        # im2col: fold the K taps into the MXU contraction -> one matmul
        for k in range(K):
            col_ref[k * C_in:(k + 1) * C_in, :] = x[:, k * dilation: k * dilation + tile]
        acc = jnp.dot(w_ref[...], col_ref[...], preferred_element_type=jnp.float32)
    else:
        acc = jnp.zeros(o_ref.shape, jnp.float32)
        for k in range(K):
            acc = acc + jnp.dot(w_ref[:, k * C_in:(k + 1) * C_in],
                                x[:, k * dilation: k * dilation + tile],
                                preferred_element_type=jnp.float32)
    acc = acc + b_ref[...]
    if tanh_out:
        acc = jnp.tanh(acc)
    o_ref[...] = acc.astype(o_ref.dtype)


def conv1d_pallas(x, w_fold, b_col, *, K, dilation, pad_l, pad_r, lrelu_in=False,
                  slope=0.1, tanh_out=False, out_dtype=None, tile_t=512):
    """x:(B,C_in,T); w_fold:(C_out,K*C_in); b_col:(C_out,1) f32 -> (B,C_out,T_out)."""
    B, C_in, T = x.shape
    C_out = w_fold.shape[0]
    assert w_fold.shape == (C_out, K * C_in)
    cd = w_fold.dtype
    out_dtype = cd if out_dtype is None else out_dtype

    halo = dilation * (K - 1)
    T_out = T + pad_l + pad_r - halo
    assert T_out > 0
    halo_blk = max(128, _round_up(max(halo, 1), 128))
    tile = min(tile_t, _round_up(T_out, 128))
    tile = _round_up(tile, halo_blk)
    n_t = _cdiv(T_out, tile)
    T_out_pad = n_t * tile
    T_in_pad = T_out_pad + halo_blk
    x_p = jnp.zeros((B, C_in, T_in_pad), cd).at[:, :, pad_l:pad_l + T].set(x.astype(cd))

    fold = (K > 1) and (C_in % _sublane_pack(cd) == 0)
    scratch = [pltpu.VMEM((C_in, tile + halo_blk), cd)]
    if fold:
        scratch.append(pltpu.VMEM((K * C_in, tile), cd))

    hb = tile // halo_blk
    kernel = functools.partial(_conv1d_kernel, K=K, dilation=dilation, C_in=C_in,
                               lrelu_in=lrelu_in, slope=slope, tanh_out=tanh_out)
    out = pl.pallas_call(
        kernel,
        out_shape=jax.ShapeDtypeStruct((B, C_out, T_out_pad), out_dtype),
        grid=(B, n_t),
        in_specs=[
            pl.BlockSpec((None, C_in, tile), lambda b, t: (b, 0, t)),
            pl.BlockSpec((None, C_in, halo_blk), lambda b, t: (b, 0, (t + 1) * hb)),
            pl.BlockSpec((C_out, K * C_in), lambda b, t: (0, 0)),
            pl.BlockSpec((C_out, 1), lambda b, t: (0, 0)),
        ],
        out_specs=pl.BlockSpec((None, C_out, tile), lambda b, t: (b, 0, t)),
        scratch_shapes=scratch,
        compiler_params=pltpu.CompilerParams(
            dimension_semantics=("parallel", "parallel"),
            vmem_limit_bytes=_VMEM_LIMIT),
    )(x_p, x_p, w_fold, b_col)
    return out[:, :, :T_out]


# --------------------------------------------------------------------------------------
# Pallas kernel 2: fused ResBlock pair  lrelu -> conv1 -> lrelu -> conv2 -> +residual
# --------------------------------------------------------------------------------------
def _resblock_pair_kernel(x_ref, xh_ref, w1_ref, b1_ref, w2_ref, b2_ref, o_ref,
                          win_ref, col1_ref=None, col2_ref=None, *,
                          K1, d1, K2, d2, p1, p2, C, slope, T_valid):
    tile = o_ref.shape[-1]
    tw = x_ref.shape[-1]
    win_ref[:, :tw] = x_ref[...]
    win_ref[:, tw:] = xh_ref[...]
    xw = win_ref[...]                      # (C, tile + halo_blk) resblock input window
    win1 = tile + 2 * p2                   # conv1 output window needed by conv2

    a = jnp.where(xw >= 0, xw, slope * xw)  # lrelu(x)
    if col1_ref is not None:
        for k in range(K1):
            col1_ref[k * C:(k + 1) * C, :] = a[:, k * d1: k * d1 + win1]
        o1 = jnp.dot(w1_ref[...], col1_ref[...], preferred_element_type=jnp.float32)
    else:
        o1 = jnp.zeros((C, win1), jnp.float32)
        for k in range(K1):
            o1 = o1 + jnp.dot(w1_ref[:, k * C:(k + 1) * C],
                              a[:, k * d1: k * d1 + win1],
                              preferred_element_type=jnp.float32)
    o1 = o1 + b1_ref[...]

    # zero out conv1 outputs that lie outside the valid sequence (conv2's zero padding)
    n0 = pl.program_id(1) * tile
    m_idx = lax.broadcasted_iota(jnp.int32, (1, win1), 1) + (n0 - p2)
    o1 = jnp.where((m_idx >= 0) & (m_idx < T_valid), o1, 0.0)

    bsig = jnp.where(o1 >= 0, o1, slope * o1).astype(xw.dtype)  # lrelu(conv1)
    if col2_ref is not None:
        for k in range(K2):
            col2_ref[k * C:(k + 1) * C, :] = bsig[:, k * d2: k * d2 + tile]
        o2 = jnp.dot(w2_ref[...], col2_ref[...], preferred_element_type=jnp.float32)
    else:
        o2 = jnp.zeros((C, tile), jnp.float32)
        for k in range(K2):
            o2 = o2 + jnp.dot(w2_ref[:, k * C:(k + 1) * C],
                              bsig[:, k * d2: k * d2 + tile],
                              preferred_element_type=jnp.float32)
    o2 = o2 + b2_ref[...]

    res = xw[:, p1 + p2: p1 + p2 + tile].astype(jnp.float32)    # residual (pre-lrelu x)
    o_ref[...] = (o2 + res).astype(o_ref.dtype)


def resblock_pair_pallas(x, w1f, b1, w2f, b2, *, K1, d1, K2, d2=1, slope=0.1,
                         out_dtype=None, tile_t=512):
    B, C, T = x.shape
    cd = w1f.dtype
    out_dtype = cd if out_dtype is None else out_dtype
    assert (d1 * (K1 - 1)) % 2 == 0 and (d2 * (K2 - 1)) % 2 == 0, \
        "ResBlock convs must be same-length (odd kernels)"
    assert w1f.shape == (C, K1 * C) and w2f.shape == (C, K2 * C)
    p1 = (d1 * (K1 - 1)) // 2
    p2 = (d2 * (K2 - 1)) // 2
    halo = 2 * (p1 + p2)
    halo_blk = max(128, _round_up(max(halo, 1), 128))
    tile = min(tile_t, _round_up(T, 128))
    tile = _round_up(tile, halo_blk)
    n_t = _cdiv(T, tile)
    T_pad = n_t * tile
    L = T_pad + halo_blk
    x_p = jnp.zeros((B, C, L), cd).at[:, :, p1 + p2: p1 + p2 + T].set(x.astype(cd))

    win1 = tile + 2 * p2
    fold = C % _sublane_pack(cd) == 0
    scratch = [pltpu.VMEM((C, tile + halo_blk), cd)]
    if fold:
        scratch.append(pltpu.VMEM((K1 * C, win1), cd))
        scratch.append(pltpu.VMEM((K2 * C, tile), cd))

    hb = tile // halo_blk
    kernel = functools.partial(_resblock_pair_kernel, K1=K1, d1=d1, K2=K2, d2=d2,
                               p1=p1, p2=p2, C=C, slope=slope, T_valid=T)
    out = pl.pallas_call(
        kernel,
        out_shape=jax.ShapeDtypeStruct((B, C, T_pad), out_dtype),
        grid=(B, n_t),
        in_specs=[
            pl.BlockSpec((None, C, tile), lambda b, t: (b, 0, t)),
            pl.BlockSpec((None, C, halo_blk), lambda b, t: (b, 0, (t + 1) * hb)),
            pl.BlockSpec((C, K1 * C), lambda b, t: (0, 0)),
            pl.BlockSpec((C, 1), lambda b, t: (0, 0)),
            pl.BlockSpec((C, K2 * C), lambda b, t: (0, 0)),
            pl.BlockSpec((C, 1), lambda b, t: (0, 0)),
        ],
        out_specs=pl.BlockSpec((None, C, tile), lambda b, t: (b, 0, t)),
        scratch_shapes=scratch,
        compiler_params=pltpu.CompilerParams(
            dimension_semantics=("parallel", "parallel"),
            vmem_limit_bytes=_VMEM_LIMIT),
    )(x_p, x_p, w1f, b1, w2f, b2)
    return out[:, :, :T]


# --------------------------------------------------------------------------------------
# parameter preparation (weight-norm already folded into weights; done once)
# --------------------------------------------------------------------------------------
def _make_polyphase(w_t, b, K, stride, padding):
    """ConvTranspose1d weight (C_in, C_out, K) -> polyphase Conv1d weights.

    Returns (W_poly (s*C_out, C_in, K_poly), b_poly (s*C_out,), o_min, o_max)."""
    C_in, C_out, _ = w_t.shape
    s = stride
    w_eq = jnp.flip(jnp.transpose(w_t, (1, 0, 2)), axis=2)  # (C_out, C_in, K)
    q = K - 1 - padding
    assert q >= 0, "unsupported ConvTranspose padding"
    phases, offs = [], []
    for r in range(s):
        k0 = (q - r) % s
        taps = list(range(k0, K, s))
        o_r = (r + k0 - q) // s
        phases.append((taps, o_r))
        offs.extend(o_r + j for j in range(len(taps)))
    o_min, o_max = min(offs), max(offs)
    K_poly = o_max - o_min + 1
    Wp = jnp.zeros((s * C_out, C_in, K_poly), w_eq.dtype)
    for r, (taps, o_r) in enumerate(phases):
        for j, k in enumerate(taps):
            Wp = Wp.at[r * C_out:(r + 1) * C_out, :, o_r + j - o_min].set(w_eq[:, :, k])
    b_poly = jnp.tile(b, s)
    return Wp, b_poly, o_min, o_max


def prepare_generator_params(params, k_u, k_r, d_r, compute_dtype=jnp.bfloat16):
    cd, f32 = compute_dtype, jnp.float32
    prep = {
        "enter": dict(w=_fold_conv_weight(params["enter_w"]).astype(cd),
                      b=params["enter_b"].reshape(-1, 1).astype(f32), K=7, d=1, p=3),
        "blocks": [],
    }
    for l, bp in enumerate(params["blocks"]):
        K = k_u[l]
        s = K // 2
        p = (K - K // 2) // 2
        Wp, b_poly, o_min, o_max = _make_polyphase(bp["up_w"], bp["up_b"], K, s, p)
        blk = dict(s=s, K=K, p=p, K_poly=Wp.shape[-1], o_min=o_min, o_max=o_max,
                   up_w=_fold_conv_weight(Wp).astype(cd),
                   up_b=b_poly.reshape(-1, 1).astype(f32), res=[])
        for j, kr in enumerate(k_r):
            rp = bp["res"][j]
            pairs = []
            for i, d in enumerate(d_r[j]):
                pairs.append(dict(
                    K1=kr, d1=d, K2=kr, d2=1,
                    w1=_fold_conv_weight(rp["c1_w"][i]).astype(cd),
                    b1=rp["c1_b"][i].reshape(-1, 1).astype(f32),
                    w2=_fold_conv_weight(rp["c2_w"][i]).astype(cd),
                    b2=rp["c2_b"][i].reshape(-1, 1).astype(f32)))
            blk["res"].append(pairs)
        prep["blocks"].append(blk)
    prep["out"] = dict(w=_fold_conv_weight(params["out_w"]).astype(cd),
                       b=params["out_b"].reshape(-1, 1).astype(f32), K=7, d=1, p=3)
    return prep


# --------------------------------------------------------------------------------------
# Generator forward (Pallas path)
# --------------------------------------------------------------------------------------
def generator_forward_pallas(prep, x, *, slope=0.1, tile_t=512):
    e = prep["enter"]
    x = conv1d_pallas(x, e["w"], e["b"], K=e["K"], dilation=e["d"], pad_l=e["p"],
                      pad_r=e["p"], lrelu_in=False, slope=slope, tile_t=tile_t)
    for blk in prep["blocks"]:
        s, K, p = blk["s"], blk["K"], blk["p"]
        B, _, T = x.shape
        T_ct = (T - 1) * s - 2 * p + K          # ConvTranspose1d output length
        M = _cdiv(T_ct, s)                      # polyphase frames
        pad_l = -blk["o_min"]
        pad_r = max(0, M - T + blk["o_max"])
        # polyphase transposed conv: s*C_out channels on the un-stuffed input
        y = conv1d_pallas(x, blk["up_w"], blk["up_b"], K=blk["K_poly"], dilation=1,
                          pad_l=pad_l, pad_r=pad_r, lrelu_in=True, slope=slope,
                          tile_t=tile_t)
        y = y[:, :, :M]
        C_out = y.shape[1] // s
        # TODO(synk): phase interleave + MRF averaging are left as plain XLA glue.
        x = y.reshape(B, s, C_out, M).transpose(0, 2, 3, 1).reshape(B, C_out, M * s)
        x = x[:, :, :T_ct]
        sum_x = None
        for pairs in blk["res"]:
            out = x
            for pr in pairs:
                out = resblock_pair_pallas(out, pr["w1"], pr["b1"], pr["w2"], pr["b2"],
                                           K1=pr["K1"], d1=pr["d1"], K2=pr["K2"],
                                           d2=pr["d2"], slope=slope, tile_t=tile_t)
            sum_x = out if sum_x is None else sum_x + out
        x = sum_x / len(blk["res"])
    o = prep["out"]
    x = conv1d_pallas(x, o["w"], o["b"], K=o["K"], dilation=o["d"], pad_l=o["p"],
                      pad_r=o["p"], lrelu_in=True, slope=slope, tanh_out=True,
                      out_dtype=jnp.float32, tile_t=tile_t)
    return jnp.squeeze(x, axis=1)


# --------------------------------------------------------------------------------------
# parameter init (weight_norm reparam) + pure-JAX reference for validation
# --------------------------------------------------------------------------------------
def wn_weight(key, shape):
    kv, kg = jax.random.split(key)
    v = jax.random.normal(kv, shape, jnp.float32) * 0.1
    g = jax.random.uniform(kg, (shape[0],), jnp.float32, 0.5, 1.5)
    norm = jnp.sqrt(jnp.sum(v * v, axis=tuple(range(1, len(shape))), keepdims=True))
    return g.reshape((shape[0],) + (1,) * (len(shape) - 1)) * v / norm


def init_generator_params(key, n_mels, h, k_u, k_r, d_r):
    keys = iter(jax.random.split(key, 1024))
    nk = lambda: next(keys)
    params = {
        "enter_w": wn_weight(nk(), (h, n_mels, 7)),
        "enter_b": jax.random.normal(nk(), (h,), jnp.float32) * 0.01,
        "blocks": [],
    }
    ch = h
    for k in k_u:
        ch2 = ch // 2
        bp = {"up_w": wn_weight(nk(), (ch, ch2, k)),           # ConvTranspose1d (C_in,C_out,K)
              "up_b": jax.random.normal(nk(), (ch2,), jnp.float32) * 0.01,
              "res": []}
        for j, kr in enumerate(k_r):
            rp = {"c1_w": [], "c1_b": [], "c2_w": [], "c2_b": []}
            for _ in d_r[j]:
                rp["c1_w"].append(wn_weight(nk(), (ch2, ch2, kr)))
                rp["c1_b"].append(jax.random.normal(nk(), (ch2,), jnp.float32) * 0.01)
                rp["c2_w"].append(wn_weight(nk(), (ch2, ch2, kr)))
                rp["c2_b"].append(jax.random.normal(nk(), (ch2,), jnp.float32) * 0.01)
            bp["res"].append(rp)
        params["blocks"].append(bp)
        ch = ch2
    params["out_w"] = wn_weight(nk(), (1, ch, 7))
    params["out_b"] = jax.random.normal(nk(), (1,), jnp.float32) * 0.01
    return params


def _lrelu(x, s):
    return jnp.where(x >= 0, x, s * x)


def _conv1d_ref(x, w, b, dilation, padding):
    out = lax.conv_general_dilated(x, w, window_strides=(1,), padding=[(padding, padding)],
                                   rhs_dilation=(dilation,),
                                   dimension_numbers=("NCH", "OIH", "NCH"))
    return out + b.reshape(1, -1, 1)


def _convtr1d_ref(x, w, b, stride, padding):
    K = w.shape[2]
    w_eq = jnp.flip(jnp.transpose(w, (1, 0, 2)), axis=2)
    out = lax.conv_general_dilated(x, w_eq, window_strides=(1,),
                                   padding=[(K - 1 - padding, K - 1 - padding)],
                                   lhs_dilation=(stride,),
                                   dimension_numbers=("NCH", "OIH", "NCH"))
    return out + b.reshape(1, -1, 1)


def generator_forward_ref(params, x, k_u, k_r, d_r, slope=0.1):
    x = _conv1d_ref(x, params["enter_w"], params["enter_b"], 1, 3)
    for l, bp in enumerate(params["blocks"]):
        k = k_u[l]
        s = k // 2
        p = (k - k // 2) // 2
        x = _convtr1d_ref(_lrelu(x, slope), bp["up_w"], bp["up_b"], s, p)
        sum_x = None
        for j, kr in enumerate(k_r):
            out = x
            rp = bp["res"][j]
            for i, d in enumerate(d_r[j]):
                xt = _conv1d_ref(_lrelu(out, slope), rp["c1_w"][i], rp["c1_b"][i], d,
                                 get_padding(kr, d))
                xt = _conv1d_ref(_lrelu(xt, slope), rp["c2_w"][i], rp["c2_b"][i], 1,
                                 get_padding(kr, 1))
                out = xt + out
            sum_x = out if sum_x is None else sum_x + out
        x = sum_x / len(k_r)
    x = _conv1d_ref(_lrelu(x, slope), params["out_w"], params["out_b"], 1, 3)
    return jnp.tanh(x)[:, 0, :]


# --------------------------------------------------------------------------------------
if __name__ == "__main__":
    # Small config consistent with the module: Generator(h=32, k_u=[4,4], k_r=[3,5],
    # d_r=[[1,2],[1,2]]), n_mels=8.  T=80 + tile_t=128 exercises multi-tile + halo paths.
    B, N_MELS, T = 2, 8, 80
    H = 32
    K_U = [4, 4]
    K_R = [3, 5]
    D_R = [[1, 2], [1, 2]]
    SLOPE = 0.1

    key = jax.random.PRNGKey(0)
    kp, kx = jax.random.split(key)
    params = init_generator_params(kp, N_MELS, H, K_U, K_R, D_R)
    x = jax.random.normal(kx, (B, N_MELS, T), jnp.float32)

    ref = jax.block_until_ready(generator_forward_ref(params, x, K_U, K_R, D_R, SLOPE))

    # 1) f32-operand path: tight numerical validation of the Pallas kernels.
    prep_f32 = prepare_generator_params(params, K_U, K_R, D_R, jnp.float32)
    out_f32 = jax.block_until_ready(
        generator_forward_pallas(prep_f32, x, slope=SLOPE, tile_t=128))
    assert out_f32.shape == (B, T * (K_U[0] // 2) * (K_U[1] // 2)), out_f32.shape
    err = float(jnp.max(jnp.abs(out_f32 - ref)))
    assert err < 5e-4, f"f32 path max abs err {err}"

    # 2) bf16 MXU-operand path (production configuration): loose validation.
    prep_bf16 = prepare_generator_params(params, K_U, K_R, D_R, jnp.bfloat16)
    out_bf16 = jax.block_until_ready(
        generator_forward_pallas(prep_bf16, x, slope=SLOPE, tile_t=128))
    rel = float(jnp.linalg.norm(out_bf16 - ref) / (jnp.linalg.norm(ref) + 1e-12))
    assert rel < 1e-1, f"bf16 path rel l2 err {rel}"

    print("KERNEL_OK")
</pallas_src>

<mosaic_0001>
module attributes {stable_mosaic.version = 11 : i64} {
  func.func @_conv1d_kernel(%arg0: i32, %arg1: i32, %arg2: memref<1x8x128xf32, #tpu.memory_space<vmem>>, %arg3: memref<1x8x128xf32, #tpu.memory_space<vmem>>, %arg4: memref<32x56xf32, #tpu.memory_space<vmem>>, %arg5: memref<32x1xf32, #tpu.memory_space<vmem>>, %arg6: memref<1x32x128xf32, #tpu.memory_space<vmem>>, %arg7: memref<8x256xf32, #tpu.memory_space<vmem>>, %arg8: memref<56x128xf32, #tpu.memory_space<vmem>>) attributes {dimension_semantics = [#tpu.dimension_semantics<parallel>, #tpu.dimension_semantics<parallel>], iteration_bounds = array<i64: 2, 1>, scalar_prefetch = 0 : i64, scratch_operands = 2 : i64, tpu.core_type = #tpu.core_type<tc>, window_params = [{transform_indices = @transform_0, window_bounds = array<i64: 1, 8, 128>}, {transform_indices = @transform_1, window_bounds = array<i64: 1, 8, 128>}, {pipeline_mode = #tpu.pipeline_mode<synchronous>, transform_indices = @transform_2, window_bounds = array<i64: 32, 56>}, {pipeline_mode = #tpu.pipeline_mode<synchronous>, transform_indices = @transform_3, window_bounds = array<i64: 32, 1>}, {transform_indices = @transform_4, window_bounds = array<i64: 1, 32, 128>}]} {
    %c0 = arith.constant 0 : index
    %c0_0 = arith.constant 0 : index
    %c0_1 = arith.constant 0 : index
    %0 = vector.load %arg2[%c0, %c0_0, %c0_1] : memref<1x8x128xf32, #tpu.memory_space<vmem>>, vector<1x8x128xf32>
    %1 = vector.shape_cast %0 : vector<1x8x128xf32> to vector<8x128xf32>
    %c0_2 = arith.constant 0 : index
    %c0_3 = arith.constant 0 : index
    %2 = vector.load %arg7[%c0_2, %c0_3] : memref<8x256xf32, #tpu.memory_space<vmem>>, vector<8x128xf32>
    tpu.vector_store %arg7[%c0_2, %c0_3], %1 {strides = array<i32>} : memref<8x256xf32, #tpu.memory_space<vmem>>, vector<8x128xf32>,
    %c0_4 = arith.constant 0 : index
    %c0_5 = arith.constant 0 : index
    %c0_6 = arith.constant 0 : index
    %3 = vector.load %arg3[%c0_4, %c0_5, %c0_6] : memref<1x8x128xf32, #tpu.memory_space<vmem>>, vector<1x8x128xf32>
    %4 = vector.shape_cast %3 : vector<1x8x128xf32> to vector<8x128xf32>
    %c0_7 = arith.constant 0 : index
    %c128 = arith.constant 128 : index
    %5 = vector.load %arg7[%c0_7, %c128] : memref<8x256xf32, #tpu.memory_space<vmem>>, vector<8x128xf32>
    tpu.vector_store %arg7[%c0_7, %c128], %4 {strides = array<i32>} : memref<8x256xf32, #tpu.memory_space<vmem>>, vector<8x128xf32>,
    %c0_8 = arith.constant 0 : index
    %c0_9 = arith.constant 0 : index
    %6 = vector.load %arg7[%c0_8, %c0_9] : memref<8x256xf32, #tpu.memory_space<vmem>>, vector<8x256xf32>
    %7 = vector.extract_strided_slice %6 {offsets = [0, 0], sizes = [8, 128], strides = [1, 1]} : vector<8x256xf32> to vector<8x128xf32>
    %c0_10 = arith.constant 0 : index
    %c0_11 = arith.constant 0 : index
    %8 = vector.load %arg8[%c0_10, %c0_11] : memref<56x128xf32, #tpu.memory_space<vmem>>, vector<8x128xf32>
    tpu.vector_store %arg8[%c0_10, %c0_11], %7 {strides = array<i32>} : memref<56x128xf32, #tpu.memory_space<vmem>>, vector<8x128xf32>,
    %9 = vector.extract_strided_slice %6 {offsets = [0, 1], sizes = [8, 128], strides = [1, 1]} : vector<8x256xf32> to vector<8x128xf32>
    %c8 = arith.constant 8 : index
    %c0_12 = arith.constant 0 : index
    %10 = vector.load %arg8[%c8, %c0_12] : memref<56x128xf32, #tpu.memory_space<vmem>>, vector<8x128xf32>
    tpu.vector_store %arg8[%c8, %c0_12], %9 {strides = array<i32>} : memref<56x128xf32, #tpu.memory_space<vmem>>, vector<8x128xf32>,
    %11 = vector.extract_strided_slice %6 {offsets = [0, 2], sizes = [8, 128], strides = [1, 1]} : vector<8x256xf32> to vector<8x128xf32>
    %c16 = arith.constant 16 : index
    %c0_13 = arith.constant 0 : index
    %12 = vector.load %arg8[%c16, %c0_13] : memref<56x128xf32, #tpu.memory_space<vmem>>, vector<8x128xf32>
    tpu.vector_store %arg8[%c16, %c0_13], %11 {strides = array<i32>} : memref<56x128xf32, #tpu.memory_space<vmem>>, vector<8x128xf32>,
    %13 = vector.extract_strided_slice %6 {offsets = [0, 3], sizes = [8, 128], strides = [1, 1]} : vector<8x256xf32> to vector<8x128xf32>
    %c24 = arith.constant 24 : index
    %c0_14 = arith.constant 0 : index
    %14 = vector.load %arg8[%c24, %c0_14] : memref<56x128xf32, #tpu.memory_space<vmem>>, vector<8x128xf32>
    tpu.vector_store %arg8[%c24, %c0_14], %13 {strides = array<i32>} : memref<56x128xf32, #tpu.memory_space<vmem>>, vector<8x128xf32>,
    %15 = vector.extract_strided_slice %6 {offsets = [0, 4], sizes = [8, 128], strides = [1, 1]} : vector<8x256xf32> to vector<8x128xf32>
    %c32 = arith.constant 32 : index
    %c0_15 = arith.constant 0 : index
    %16 = vector.load %arg8[%c32, %c0_15] : memref<56x128xf32, #tpu.memory_space<vmem>>, vector<8x128xf32>
    tpu.vector_store %arg8[%c32, %c0_15], %15 {strides = array<i32>} : memref<56x128xf32, #tpu.memory_space<vmem>>, vector<8x128xf32>,
    %17 = vector.extract_strided_slice %6 {offsets = [0, 5], sizes = [8, 128], strides = [1, 1]} : vector<8x256xf32> to vector<8x128xf32>
    %c40 = arith.constant 40 : index
    %c0_16 = arith.constant 0 : index
    %18 = vector.load %arg8[%c40, %c0_16] : memref<56x128xf32, #tpu.memory_space<vmem>>, vector<8x128xf32>
    tpu.vector_store %arg8[%c40, %c0_16], %17 {strides = array<i32>} : memref<56x128xf32, #tpu.memory_space<vmem>>, vector<8x128xf32>,
    %19 = vector.extract_strided_slice %6 {offsets = [0, 6], sizes = [8, 128], strides = [1, 1]} : vector<8x256xf32> to vector<8x128xf32>
    %c48 = arith.constant 48 : index
    %c0_17 = arith.constant 0 : index
    %20 = vector.load %arg8[%c48, %c0_17] : memref<56x128xf32, #tpu.memory_space<vmem>>, vector<8x128xf32>
    tpu.vector_store %arg8[%c48, %c0_17], %19 {strides = array<i32>} : memref<56x128xf32, #tpu.memory_space<vmem>>, vector<8x128xf32>,
    %c0_18 = arith.constant 0 : index
    %c0_19 = arith.constant 0 : index
    %21 = vector.load %arg4[%c0_18, %c0_19] : memref<32x56xf32, #tpu.memory_space<vmem>>, vector<32x56xf32>
    %c0_20 = arith.constant 0 : index
    %c0_21 = arith.constant 0 : index
    %22 = vector.load %arg8[%c0_20, %c0_21] : memref<56x128xf32, #tpu.memory_space<vmem>>, vector<56x128xf32>
    %cst = arith.constant dense<0.000000e+00> : vector<32x128xf32>
    %23 = tpu.matmul %21, %22, %cst {dimension_numbers = #tpu.dot_dimension_numbers<[1], [0], [0], [1], [0, 0, 1, 1], [], []>} : vector<32x56xf32>, vector<56x128xf32>, vector<32x128xf32> -> vector<32x128xf32>
    %c0_22 = arith.constant 0 : index
    %c0_23 = arith.constant 0 : index
    %24 = vector.load %arg5[%c0_22, %c0_23] : memref<32x1xf32, #tpu.memory_space<vmem>>, vector<32x1xf32>
    %25 = vector.broadcast %24 : vector<32x1xf32> to vector<32x128xf32>
    %26 = arith.addf %23, %25 : vector<32x128xf32>
    %c0_24 = arith.constant 0 : index
    %c0_25 = arith.constant 0 : index
    %c0_26 = arith.constant 0 : index
    %27 = vector.load %arg6[%c0_24, %c0_25, %c0_26] : memref<1x32x128xf32, #tpu.memory_space<vmem>>, vector<1x32x128xf32>
    %28 = vector.shape_cast %27 : vector<1x32x128xf32> to vector<32x128xf32>
    %29 = vector.shape_cast %26 : vector<32x128xf32> to vector<1x32x128xf32>
    tpu.vector_store %arg6[%c0_24, %c0_25, %c0_26], %29 {strides = array<i32>} : memref<1x32x128xf32, #tpu.memory_space<vmem>>, vector<1x32x128xf32>,
    return
  }
  func.func @transform_0(%arg0: i32, %arg1: i32) -> (i32, i32, i32) {
    %c0_i32 = arith.constant 0 : i32
    %c0_i32_0 = arith.constant 0 : i32
    return %arg0, %c0_i32, %arg1 : i32, i32, i32
  }
  func.func @transform_1(%arg0: i32, %arg1: i32) -> (i32, i32, i32) {
    %c1_i32 = arith.constant 1 : i32
    %0 = arith.addi %arg1, %c1_i32 : i32
    %c1_i32_0 = arith.constant 1 : i32
    %1 = arith.muli %0, %c1_i32_0 : i32
    %c0_i32 = arith.constant 0 : i32
    %c0_i32_1 = arith.constant 0 : i32
    return %arg0, %c0_i32, %1 : i32, i32, i32
  }
  func.func @transform_2(%arg0: i32, %arg1: i32) -> (i32, i32) {
    %c0_i32 = arith.constant 0 : i32
    %c0_i32_0 = arith.constant 0 : i32
    %c0_i32_1 = arith.constant 0 : i32
    return %c0_i32, %c0_i32_0 : i32, i32
  }
  func.func @transform_3(%arg0: i32, %arg1: i32) -> (i32, i32) {
    %c0_i32 = arith.constant 0 : i32
    %c0_i32_0 = arith.constant 0 : i32
    %c0_i32_1 = arith.constant 0 : i32
    return %c0_i32, %c0_i32_0 : i32, i32
  }
  func.func @transform_4(%arg0: i32, %arg1: i32) -> (i32, i32, i32) {
    %c0_i32 = arith.constant 0 : i32
    %c0_i32_0 = arith.constant 0 : i32
    return %arg0, %c0_i32, %arg1 : i32, i32, i32
  }
}

</mosaic_0001>

<bundles_post_ra>
// kernel: tpu_custom_call.1
= control target key start
LH: loop header
LB: loop body
LE: loop exit
PB: predicated region body
PF: predicated region fallthrough
CT: control target
= control target key end

     0   :  { %9 = vsyncpa [#allocation5], 0  ;;  %s1209_s0 = inlined_call_operand.vmem [shape: f32[2,8,256], index: 0, kind: input, shape index: {}]   ;;  %s1210_s1 = inlined_call_operand.hbm [shape: f32[2,8,256], index: 1, kind: input, shape index: {}]   ;;  %s1211_s2 = inlined_call_operand.hbm [shape: f32[32,56], index: 2, kind: input, shape index: {}]   ;;  %s1212_s3 = inlined_call_operand.vmem [shape: f32[32,1], index: 3, kind: input, shape index: {}]   ;;  %s1213_s4 = inlined_call_operand.hbm [shape: f32[2,32,128], index: 4, kind: output, shape index: {}]  }
   0x1   :  { %11 = vsyncpa [#allocation5 + $0x1], 0 }
   0x2   :  { %12 = vsyncpa [#allocation8], 0 }
   0x3   :  { %13 = vsyncpa [#allocation6], 0 }
   0x4   :  { %15 = vsyncpa [#allocation6 + $0x1], 0  ;;  %s978_s15 = smov 0   ;;  %s980_s16 = smov 0  }
   0x5   :  { %s982_s17 = smov 0   ;;  %s984_s18 = smov 0  }
   0x6   :  { %s986_s19 = smov 0   ;;  %s988_s20 = smov 0  }
   0x7 LB: > { %s604_s21 = sadd.s32 4294967295, %s937_s20   ;;  %s605_s22 = sadd.s32 4294967294, %s937_s20   ;;  %s937_s20 = sphi %s988_s20, %s21_s20   ;;  %s933_s19 = sphi %s986_s19, %s1236_s19   ;;  %s929_s18 = sphi %s984_s18, %s1235_s18   ;;  %s925_s17 = sphi %s982_s17, %s1234_s17   ;;  %s921_s16 = sphi %s980_s16, %s1233_s16   ;;  %s917_s15 = sphi %s978_s15, %s1232_s15  }
   0x8   : > { %p85_p0 = scmp.ne.s32.totalorder %s921_s16, %s917_s15  ;;  %p1012_p1 = scmp.eq.s32.totalorder %s604_s21, 0 }
   0x9   : > { %p1016_p2 = scmp.eq.s32.totalorder %s604_s21, 1  ;;  %p159_p3 = scmp.eq.s32.totalorder %s605_s22, 1 }
   0xa   : > { %s1218_s23 = scalar_select %p1012_p1, 1, 0 }
   0xb   : > { %s1219_s24 = scalar_select %p1016_p2, 1, 0 }
   0xc   : > { %p1022_p4 = por %p1012_p1, %p85_p0  ;;  %p606_p5 = scmp.ge.s32.totalorder %s937_s20, 1 }
   0xd   : > { %p1027_p6 = por %p159_p3, %p85_p0  ;;  %p166_p7 = scmp.lt.s32.totalorder %s937_s20, 3 }
   0xe   : > { %s1220_s25 = scalar_select %p1022_p4, 1, 0 }
   0xf   : > { %s1221_s26 = scalar_select %p1027_p6, 1, 0 }
  0x10   : > { %p1032_p8 = pnand %p606_p5, %p166_p7  ;;  %s939_s28 = smov [#allocation7]  }
  0x11   : > { %s178_s29 = sshll.u32 %s939_s28, 4  ;;  %s33_s5 = sadd.s32 1, %s933_s19  ;;  %s179_s29 = int_to_ptr.vmem [resolvable:$true] %s178_s29 }
  0x12   : > { %s1222_s27 = scalar_select %p1032_p8, 1, 0 }
  0x13   : > { %p689_p9 = pneg %p1032_p8  ;;  %s792_s8 = scalar_lea.hbm %s1211_s2, 512 }
  0x14   : > { %p793_p12 = scmp.ne.s32.totalorder %s1211_s2, %s792_s8  ;;  %p799_p5 = scmp.lt.u32.totalorder %s792_s8, %s1211_s2 }
  0x15   : > { %p1041_p11 = pnand %p689_p9, %p1012_p1 }
  0x17   : > { %p794_p13 = pneg %p1041_p11 }
  0x19   : > { %p795_p0 = pnand %p794_p13, %p793_p12 }
  0x1b   : > { %p796_p3 = pneg %p795_p0 }
  0x1d   : > { %p801_p7 = pnand %p799_p5, %p796_p3 }
  0x1f   : > { %804 = shalt.err (!%p801_p7)
}
  0x20   : > { %s805_s13 = scalar_lea.vmem %s179_s29, 512  ;;  %p813_p1 = scmp.lt.s32.totalorder %s179_s29, %s179_s29 }
  0x21   : > { %p806_p9 = scmp.ne.s32.totalorder %s179_s29, %s805_s13  ;;  %p814_p4 = scmp.lt.s32.totalorder %s805_s13, %s805_s13 }
  0x23   : > { %p808_p10 = pnand %p806_p9, %p794_p13  ;;  %p815_p8 = por %p814_p4, %p813_p1 }
  0x25   : > { %p809_p6 = pneg %p808_p10 }
  0x27   : > { %p816_p2 = pnand %p815_p8, %p809_p6 }
  0x29   : > { %819 = shalt.err (!%p816_p2)
}
  0x2a   : > { %s940_s14 = smov 128   ;;  %s941_s21 = smov 8  }
  0x2b   : > { %692 = dma.hbm_to_vmem [thread:$0]  (!%p1041_p11), %s1211_s2, 512, %s179_s29, [#allocation8], %s940_s14, %s940_s14, %s941_s21  }
  0x2c   : > { %p35_p1 = scmp.ge.s32.totalorder %s33_s5, 2  ;;  %p79_p2 = scmp.ne.s32.totalorder %s925_s17, %s921_s16 }
  0x2d   : > { %p80_p4 = scmp.eq.s32.totalorder %s937_s20, 0  ;;  %s72_s6 = sadd.s32 1, %s925_s17 }
  0x2e   : > { %s1238_s5 = smov (%p35_p1, %s33_s5), 0  ;;  %p1224_p6 = scmp.ne.s32.totalorder %s1219_s24, 0 }
  0x2f   : > { %s67_s8 = ssub.s32 %s933_s19, %s1238_s5  ;;  %p81_p10 = por %p80_p4, %p79_p2 }
  0x30   : > { %p1070_p8 = por %p1224_p6, %p79_p2  ;;  %p70_p12 = scmp.eq.s32.totalorder %s67_s8, 0 }
  0x31   : > { %s206_s30 = sand.u32 1, %s925_s17   ;;  %p702_p13 = scmp.lt.s32.totalorder %s937_s20, 2 }
  0x32   : > { %s609_s9 = sshll.u32 %s206_s30, 3  ;;  %s627_s29 = sshll.u32 %s933_s19, 8 }
  0x33   : > { %s1079_s10 = scalar_select %p70_p12, %s925_s17, %s72_s6  }
  0x34   : > { %s528_s13 = scalar_lea.hbm %s1210_s1, %s627_s29  ;;  %s210_s14 = scalar_lea.vmem [#allocation4], %s609_s9 }
  0x35   : > { %s220_s21 = sshll.u32 %s210_s14, 4  ;;  %s1085_s24 = scalar_lea.hbm %s528_s13, 128  ;;  %s1087_s21 = int_to_ptr.vmem [resolvable:$true] %s220_s21 }
  0x36   : > { %p1089_p11 = pnand %p702_p13, %p81_p10  ;;  %s207_s28 = scalar_lea.sflag [#allocation5], %s206_s30 }
  0x37   : > { %s850_s6 = scalar_lea.hbm %s528_s13, 256  ;;  %s825_s29 = scalar_lea.hbm %s1210_s1, 512 }
  0x38   : > { %p821_p0 = scmp.ne.s32.totalorder %s1085_s24, %s850_s6  ;;  %p822_p3 = pneg %p1089_p11 }
  0x39   : > { %p826_p9 = scmp.lt.u32.totalorder %s1085_s24, %s1210_s1  ;;  %p827_p1 = scmp.lt.u32.totalorder %s825_s29, %s850_s6 }
  0x3a   : > { %p823_p5 = pnand %p822_p3, %p821_p0  ;;  %p829_p4 = scmp.lt.u32.totalorder %s850_s6, %s1085_s24 }
  0x3b   : > { %p828_p2 = por %p827_p1, %p826_p9 }
  0x3c   : > { %p824_p7 = pneg %p823_p5 }
  0x3d   : > { %p830_p6 = por %p829_p4, %p828_p2 }
  0x3f   : > { %p831_p10 = pnand %p830_p6, %p824_p7 }
  0x41   : > { %834 = shalt.err (!%p831_p10)
}
  0x42   : > { %s835_s30 = scalar_lea.vmem %s1087_s21, 128  ;;  %s942_s13 = smov [#allocation4]  }
  0x43   : > { %p836_p12 = scmp.ne.s32.totalorder %s1087_s21, %s835_s30  ;;  %s840_s14 = sshll.u32 %s942_s13, 4  ;;  %s841_s14 = int_to_ptr.vmem [resolvable:$false] %s840_s14 }
  0x44   : > { %s842_s8 = scalar_lea.vmem %s841_s14, 256  ;;  %p843_p5 = scmp.lt.s32.totalorder %s1087_s21, %s841_s14 }
  0x45   : > { %p838_p13 = pnand %p836_p12, %p822_p3  ;;  %p844_p9 = scmp.lt.s32.totalorder %s842_s8, %s835_s30 }
  0x47   : > { %p839_p0 = pneg %p838_p13  ;;  %p845_p1 = por %p844_p9, %p843_p5 }
  0x49   : > { %p846_p2 = pnand %p845_p1, %p839_p0 }
  0x4b   : > { %849 = shalt.err (!%p846_p2)
}
  0x4c   : > { %696 = dma.hbm_to_vmem [thread:$0]  (!%p1089_p11), %s1085_s24, 128, %s1087_s21, %s207_s28  }
  0x4d   : > { %p1227_p7 = scmp.ne.s32.totalorder %s1222_s27, 0 }
  0x4e   : > { %s1120_s6 = sand.u32 (!%p1227_p7), 1, %s921_s16   ;;  %p1228_p3 = scmp.ne.s32.totalorder (!%p1227_p7), %s1220_s25, 0 }
  0x4f   : > { %229 = sbr.rel (%p1227_p7) target bundleno = 463 (0x1cf), region = 36  ;;  %s613_s9 = sshll.u32 (!%p1227_p7), %s1120_s6, 3 }
  0x50   : > { %s232_s29 = scalar_lea.sflag (!%p1227_p7), [#allocation5], %s1120_s6  ;;  %s235_s11 = scalar_lea.vmem (!%p1227_p7), [#allocation4], %s613_s9 }
  0x56   : > { %904 = dma.done.wait (%p1228_p3), %s232_s29, 128  }
  0x57   : > { %906 = vsyncadd (%p1228_p3), %s232_s29, 4294967168  ;;  %p1229_p4 = scmp.ne.s32.totalorder %s1218_s23, 0 }
  0x59   : > { %908 = dma.done.wait (%p1229_p4), [#allocation8], 512  }
  0x5a   : > { %910 = vsyncadd (%p1229_p4), [#allocation8], 4294966784  ;;  %p272_p11 = scmp.lt.s32.totalorder %s929_s18, 1  ;;  %v283_v1 = vld [vmem:[%s235_s11] sm:$0xff]  ;;  %s943_s25 = smov 127   ;;  %v338_v3 = vld [vmem:[#allocation7] sm:$0xff] }
  0x5b   : > { %s944_s12 = smov 125   ;;  %s945_s30 = smov 126   ;;  %vm373_vm0 = vcmask 457728   ;;  %v340_v4 = vld [vmem:[#allocation7 + $0x10] sm:$0xff]  ;;  %v947_v5 = vmov 0   ;;  %v351_v7 = vld [vmem:[%s1212_s3 + $0x10] sm:$0xff] }
  0x5c   : > { %s273_s27 = scalar_select %p272_p11, %s929_s18, 1  ;;  %655 = vmatprep.mubr.msk.f32.mxu0 %vm373_vm0, %v338_v3  ;;  %658 = vmatprep.mubr.msk.f32.mxu1 %vm373_vm0, %v340_v4  ;;  %v349_v6 = vld [vmem:[%s1212_s3] sm:$0xff]  ;;  %v350_v8 = vld [vmem:[%s1212_s3 + $0x8] sm:$0xff]  ;;  %v352_v9 = vld [vmem:[%s1212_s3 + $0x18] sm:$0xff]  ;;  %vm294_vm1 = vcmask 1039360   ;;  %vm310_vm2 = vcmask 1022976  }
  0x5d   : > { %s946_s23 = smov 124   ;;  %790 = vset.pattern.permute.xlu1 %v947_v5  ;;  %791 = vset.pattern.permute.xlu0 %v947_v5  ;;  %s948_s13 = smov 123   ;;  %vm302_vm3 = vcmask 1031168   ;;  %vm318_vm4 = vcmask 1014784   ;;  %vm326_vm5 = vcmask 1006592   ;;  %vm334_vm6 = vcmask 998400  }
  0x5e   : > { %s628_s21 = sshll.u32 %s273_s27, 4  ;;  %s949_s14 = smov 122   ;;  %v339_v36 = vld [vmem:[#allocation7 + $0x8] sm:$0xff]  ;;  %v341_v37 = vld [vmem:[#allocation7 + $0x18] sm:$0xff] }
  0x5f   : > { %s279_s28 = scalar_lea.vmem %s1209_s0, %s628_s21  ;;  %s950_s9 = smov [#allocation9]  }
  0x60   : > { %v281_v0 = vld [vmem:[%s279_s28] sm:$0xff]  ;;  %s615_s28 = sshll.u32 %s1120_s6, 5  ;;  %s855_s29 = sshll.u32 %s950_s9, 4  ;;  %s856_s29 = int_to_ptr.vmem [resolvable:$false] %s855_s29 }
  0x61   : > { %v765_v2 = vpack.i.bf16 %v283_v1, %v281_v0  ;;  %s857_s11 = scalar_lea.vmem %s856_s29, 1024 }
  0x63   : > { %766 = vrot.lane.b32.xlu0 %v765_v2, %s943_s25  ;;  %776 = vrot.lane.b32.xlu1 %v765_v2, %s944_s12  ;;  %s271_s25 = scalar_lea.vmem [#allocation9], %s615_s28 }
  0x64   : > { %s490_s12 = sshll.u32 %s271_s25, 4  ;;  %s1155_s12 = int_to_ptr.vmem [resolvable:$true] %s490_s12 }
  0x65   : > { %s851_s8 = scalar_lea.vmem %s1155_s12, 512  ;;  %p858_p13 = scmp.lt.s32.totalorder %s1155_s12, %s856_s29 }
  0x66   : > { %p852_p6 = scmp.ne.s32.totalorder %s1155_s12, %s851_s8  ;;  %p859_p0 = scmp.lt.s32.totalorder %s857_s11, %s851_s8 }
  0x67   : > { %771 = vrot.lane.b32.xlu0 %v765_v2, %s945_s30  ;;  %781 = vrot.lane.b32.xlu1 %v765_v2, %s946_s23  ;;  %s629_s30 = sshll.u32 %s929_s18, 9  ;;  %s476_s18 = scalar_lea.sflag [#allocation6], %s1120_s6 }
  0x68   : > { %p853_p10 = pnand %p852_p6, %p1070_p8  ;;  %p860_p5 = por %p859_p0, %p858_p13 }
  0x6a   : > { %p854_p12 = pneg %p853_p10 }
  0x6b   : > { %786 = vrot.lane.b32.xlu0 %v765_v2, %s948_s13  ;;  %330 = vrot.lane.b32.xlu1 %v281_v0, %s949_s14 }
  0x6c   : > { %p861_p9 = pnand %p860_p5, %p854_p12 }
  0x6f   : > { %332 = vrot.lane.b32.xlu0 %v283_v1, %s949_s14  ;;  %355 = vperm.xlu1 %790, %v349_v6   ;;  %s1160_s14 = scalar_lea.hbm %s1213_s4, %s629_s30 }
  0x73   : > { %365 = vperm.xlu1 %790, %v351_v7   ;;  %360 = vperm.xlu0 %791, %v350_v8  }
  0x77   : > { %370 = vperm.xlu1 %790, %v352_v9  }
  0xd5   : > { %v767_v10 = vpop.permute.xlu0 %766  ;;  %v777_v11 = vpop.permute.xlu1 %776 }
  0xd6   : > { %v769_v12 = vunpack.i.h.bf16 %v767_v10  ;;  %v768_v13 = vunpack.i.l.bf16 %v767_v10  ;;  %v779_v14 = vunpack.i.h.bf16 %v777_v11  ;;  %v778_v15 = vunpack.i.l.bf16 %v777_v11 }
  0xd8   : > { %v295_v16 = vsel %vm294_vm1, %v768_v13, %v769_v12  ;;  %v311_v18 = vsel %vm310_vm2, %v778_v15, %v779_v14 }
  0xd9   : > { %v661_v17 = vpack.c.bf16 %v295_v16, %v281_v0  ;;  %v772_v19 = vpop.permute.xlu0 %771  ;;  %v782_v20 = vpop.permute.xlu1 %781 }
  0xda   : > { %v774_v21 = vunpack.i.h.bf16 %v772_v19  ;;  %v773_v22 = vunpack.i.l.bf16 %v772_v19  ;;  %v784_v23 = vunpack.i.h.bf16 %v782_v20  ;;  %v783_v24 = vunpack.i.l.bf16 %v782_v20 }
  0xdb   : > { %662 = vmatprep.subr.bf16.mxu0 %v661_v17  ;;  %673 = vmatprep.subr.bf16.mxu1 %v661_v17 }
  0xdc   : > { %v303_v25 = vsel %vm302_vm3, %v773_v22, %v774_v21  ;;  %664 = vmatpush3.bf16.msra.mxu0 %v661_v17  ;;  %677 = vmatpush3.bf16.msra.mxu1 %v661_v17  ;;  %v319_v28 = vsel %vm318_vm4, %v783_v24, %v784_v23 }
  0xdd   : > { %v665_v26 = vpack.c.bf16 %v311_v18, %v303_v25  ;;  %v787_v27 = vpop.permute.xlu0 %786  ;;  %v331_v31 = vpop.permute.xlu1 %330 }
  0xde   : > { %v789_v29 = vunpack.i.h.bf16 %v787_v27  ;;  %v788_v30 = vunpack.i.l.bf16 %v787_v27 }
  0xdf   : > { %666 = vmatprep.subr.bf16.mxu0 %v665_v26  ;;  %674 = vmatprep.subr.bf16.mxu1 %v665_v26 }
  0xe0   : > { %v327_v32 = vsel %vm326_vm5, %v788_v30, %v789_v29  ;;  %668 = vmatpush3.bf16.msra.mxu0 %v665_v26  ;;  %678 = vmatpush3.bf16.msra.mxu1 %v665_v26 }
  0xe1   : > { %v669_v33 = vpack.c.bf16 %v327_v32, %v319_v28  ;;  %v333_v34 = vpop.permute.xlu0 %332 }
  0xe2   : > { %v335_v35 = vsel %vm334_vm6, %v331_v31, %v333_v34 }
  0xe3   : > { %670 = vmatprep.subr.bf16.mxu0 %v669_v33  ;;  %675 = vmatprep.subr.bf16.mxu1 %v669_v33 }
  0xe4   : > { %672 = vmatpush3.bf16.msra.mxu0 %v669_v33  ;;  %679 = vmatpush3.bf16.msra.mxu1 %v669_v33 }
  0xe5   : > { %653 = vmatprep.subr.mxu0 %v335_v35  ;;  %676 = vmatprep.subr.mxu1 %v335_v35 }
  0xe8   : > { %654 = vmatpush3.msra.mxu0 %v335_v35  ;;  %680 = vmatpush3.msra.mxu1 %v335_v35 }
  0xe9   : > { %656 = vmatmul.mubr.msk.f32.vlgmr.msra.gmra.mrb[0].mxu0 %vm373_vm0, %v339_v36  ;;  %659 = vmatmul.mubr.msk.f32.vlgmr.msra.gmra.mrb[0].mxu1 %vm373_vm0, %v341_v37 }
  0xee   : > { %v356_v38 = vpop.permute.xlu1 %355 }
  0xf2   : > { %v366_v39 = vpop.permute.xlu1 %365  ;;  %v361_v40 = vpop.permute.xlu0 %360 }
  0xf6   : > { %v371_v41 = vpop.permute.xlu1 %370 }
 0x1bc   : > { %v657_v42 = vpop.f32.mrb[0].mxu0  ;;  %v660_v43 = vpop.f32.mrb[0].mxu1 }
 0x1bd   : > { %v458_v44 = vadd.f32 %v657_v42, %v361_v40  ;;  %v468_v45 = vadd.f32 %v660_v43, %v371_v41  ;;  %v452_v46 = vpop.f32.mrb[1].mxu0  ;;  %v462_v47 = vpop.f32.mrb[1].mxu1 }
 0x1be   : > { %v453_v48 = vadd.f32 %v452_v46, %v356_v38  ;;  %v463_v49 = vadd.f32 %v462_v47, %v366_v39 }
 0x1bf   : > { %472 = vst [vmem:[%s271_s25 + $0x8] sm:$0xff] %v458_v44  ;;  %474 = vst [vmem:[%s271_s25 + $0x18] sm:$0xff] %v468_v45 }
 0x1c0   : > { %471 = vst [vmem:[%s271_s25] sm:$0xff] %v453_v48  ;;  %473 = vst [vmem:[%s271_s25 + $0x10] sm:$0xff] %v463_v49 }
 0x1c1   : > { %864 = shalt.err (!%p861_p9)
}
 0x1c2   : > { %s865_s27 = scalar_lea.hbm %s1160_s14, 512  ;;  %s869_s22 = scalar_lea.hbm %s1213_s4, 1024 }
 0x1c3   : > { %p866_p1 = scmp.ne.s32.totalorder %s1160_s14, %s865_s27  ;;  %p870_p3 = scmp.lt.u32.totalorder %s1160_s14, %s1213_s4 }
 0x1c4   : > { %p871_p4 = scmp.lt.u32.totalorder %s869_s22, %s865_s27  ;;  %p873_p6 = scmp.lt.u32.totalorder %s865_s27, %s1160_s14 }
 0x1c5   : > { %p867_p2 = pnand %p866_p1, %p1070_p8 }
 0x1c6   : > { %p872_p11 = por %p871_p4, %p870_p3 }
 0x1c7   : > { %p868_p7 = pneg %p867_p2 }
 0x1c8   : > { %p874_p10 = por %p873_p6, %p872_p11 }
 0x1ca   : > { %p875_p12 = pnand %p874_p10, %p868_p7 }
 0x1cc   : > { %878 = shalt.err (!%p875_p12)
}
 0x1cd   : > { %s951_s30 = smov 128   ;;  %s952_s23 = smov 8  }
 0x1ce   : > { %687 = dma.vmem_to_hbm [thread:$0]  (%p1070_p8), %s1155_s12, 512, %s1160_s14, %s476_s18, %s951_s30, %s951_s30, %s952_s23  }
 0x1cf PF: > { %s505_s13 = sand.u32 1, %s917_s15   ;;  %p1230_p13 = scmp.ne.s32.totalorder %s1221_s26, 0 }
 0x1d0   : > { %p1231_p0 = scmp.ge.s32.totalorder %s937_s20, 2  ;;  %s506_s8 = scalar_lea.sflag [#allocation6], %s505_s13 }
 0x1d2   : > { %p698_p5 = pnand %p1231_p0, %p1230_p13 }
 0x1d4   : > { %912 = dma.done.wait (!%p698_p5), %s506_s8, 512  }
 0x1d5   : > { %914 = vsyncadd (!%p698_p5), %s506_s8, 4294966784  ;;  %s21_s20 = sadd.s32 1, %s937_s20   ;;  %s1232_s15 = smov %s921_s16 }
 0x1d6   : > { %p18_p9 = scmp.ge.s32.totalorder %s21_s20, 4   ;;  %s1233_s16 = smov %s925_s17 }
 0x1d7   : > { %s1234_s17 = smov %s1079_s10  ;;  %s1235_s18 = smov %s933_s19 }
 0x1d8   : > { %s1236_s19 = smov %s1238_s5  ;;  %20 = sbr.rel (!%p18_p9) target bundleno = 7 (0x7), region = 88 }
 0x1df   :  { %511 = vsyncpa [#allocation5], 1 }
 0x1e0   :  { %513 = vsyncpa [#allocation5 + $0x1], 1 }
 0x1e1   :  { %514 = vsyncpa [#allocation8], 1 }
 0x1e2   :  { %515 = vsyncpa [#allocation6], 1 }
 0x1e3   :  { %517 = vsyncpa [#allocation6 + $0x1], 1 }

</bundles_post_ra>
